<compile_context>
chip_gen: v7x
topology: tpu7x:2x2x1
jax: 0.10.0
libtpu: 0.0.40
codegen_flags: <defaults>
</compile_context>

<pallas_src>
import functools

import jax
import jax.numpy as jnp
from jax.experimental import pallas as pl
from jax.experimental.pallas import tpu as pltpu

BN_EPS = 1e-5
LEAKY_SLOPE = 0.1


def _round_up(x, m):
    return ((x + m - 1) // m) * m


def classblock_kernel(x_ref, w1_ref, shift_ref, w2_ref, b2_ref, out_ref):
    # ---- add_block Linear(D_in -> H) with BN scale + b1 pre-folded into W1/shift ----
    # bf16 MXU inputs, fp32 accumulation.
    h = jnp.dot(x_ref[...], w1_ref[...], preferred_element_type=jnp.float32)
    h = h + shift_ref[...]                        # fused b1 + BN shift (fp32 VPU)

    # ---- LeakyReLU(0.1) in fp32 (no bf16 VPU on v5e) ----
    h = jnp.where(h >= 0.0, h, LEAKY_SLOPE * h)

    # ---- Dropout: identity at inference ----
    # TODO(synk): stochastic dropout not implemented (inference semantics).

    # ---- classifier Linear(H -> C), bf16 MXU inputs, fp32 accumulation ----
    out = jnp.dot(h.astype(jnp.bfloat16), w2_ref[...],
                  preferred_element_type=jnp.float32)
    out_ref[...] = out + b2_ref[...]              # broadcast (1, C_pad)


@functools.partial(jax.jit, static_argnames=("tile_n",))
def classblock_forward(x, w1, b1, bn_scale, bn_shift, w2, b2, *, tile_n=256):
    N, D_in = x.shape
    H = w1.shape[1]
    C = w2.shape[1]

    # ---- host-side folding of bias + BN affine into the first linear ----
    w1_folded = w1 * bn_scale                      # (D_in, H) * (1, H)
    shift = b1 * bn_scale + bn_shift               # (1, H)

    # ---- pad to MXU / lane friendly shapes (multiples of 128) ----
    D_pad = _round_up(D_in, 128)
    H_pad = _round_up(H, 128)
    C_pad = _round_up(C, 128)
    if N <= tile_n:
        tile_n_eff = max(8, _round_up(N, 8))
        N_pad = tile_n_eff
    else:
        tile_n_eff = tile_n
        N_pad = _round_up(N, tile_n)

    x_p = jnp.pad(x, ((0, N_pad - N), (0, D_pad - D_in))).astype(jnp.bfloat16)
    w1_p = jnp.pad(w1_folded, ((0, D_pad - D_in), (0, H_pad - H))).astype(jnp.bfloat16)
    shift_p = jnp.pad(shift, ((0, 0), (0, H_pad - H))).astype(jnp.float32)
    w2_p = jnp.pad(w2, ((0, H_pad - H), (0, C_pad - C))).astype(jnp.bfloat16)
    b2_p = jnp.pad(b2, ((0, 0), (0, C_pad - C))).astype(jnp.float32)

    grid = (N_pad // tile_n_eff,)

    flops = 2 * N_pad * (D_pad * H_pad + H_pad * C_pad)
    bytes_accessed = (N_pad * D_pad * 2 + D_pad * H_pad * 2 + H_pad * C_pad * 2
                      + H_pad * 4 + C_pad * 4 + N_pad * C_pad * 4)

    out = pl.pallas_call(
        classblock_kernel,
        out_shape=jax.ShapeDtypeStruct((N_pad, C_pad), jnp.float32),
        grid_spec=pltpu.PrefetchScalarGridSpec(
            num_scalar_prefetch=0,
            grid=grid,
            in_specs=[
                pl.BlockSpec((tile_n_eff, D_pad), lambda i: (i, 0)),  # x tile
                pl.BlockSpec((D_pad, H_pad), lambda i: (0, 0)),       # W1' (resident)
                pl.BlockSpec((1, H_pad), lambda i: (0, 0)),           # folded shift
                pl.BlockSpec((H_pad, C_pad), lambda i: (0, 0)),       # W2 (resident)
                pl.BlockSpec((1, C_pad), lambda i: (0, 0)),           # b2
            ],
            out_specs=pl.BlockSpec((tile_n_eff, C_pad), lambda i: (i, 0)),
        ),
        compiler_params=pltpu.CompilerParams(
            dimension_semantics=("parallel",),
            vmem_limit_bytes=32 * 1024 * 1024,
        ),
        cost_estimate=pl.CostEstimate(
            flops=flops, transcendentals=0, bytes_accessed=bytes_accessed),
    )(x_p, w1_p, shift_p, w2_p, b2_p)

    return out[:N, :C]


def init_params(key, input_dim, linear, class_num):
    """Deterministic synthetic init mirroring weights_init_kaiming / _classifier."""
    k1, k2, k3 = jax.random.split(key, 3)

    # add_block Linear: kaiming_normal_(mode='fan_out', a=0) -> std = sqrt(2/linear)
    std1 = (2.0 / linear) ** 0.5
    w1 = std1 * jax.random.normal(k1, (input_dim, linear), jnp.float32)  # [D_in, H]
    b1 = jnp.zeros((1, linear), jnp.float32)

    # BatchNorm1d: weight ~ N(1.0, 0.02), bias = 0; running_mean=0, running_var=1
    gamma = 1.0 + 0.02 * jax.random.normal(k2, (linear,), jnp.float32)
    beta = jnp.zeros((linear,), jnp.float32)
    running_mean = jnp.zeros((linear,), jnp.float32)
    running_var = jnp.ones((linear,), jnp.float32)
    inv_std = 1.0 / jnp.sqrt(running_var + BN_EPS)
    bn_scale = (gamma * inv_std).reshape(1, linear)
    bn_shift = (beta - gamma * running_mean * inv_std).reshape(1, linear)

    # classifier Linear: normal_(std=0.001), bias = 0
    w2 = 0.001 * jax.random.normal(k3, (linear, class_num), jnp.float32)  # [H, C]
    b2 = jnp.zeros((1, class_num), jnp.float32)

    return w1, b1, bn_scale, bn_shift, w2, b2


def reference_forward(x, w1, b1, bn_scale, bn_shift, w2, b2):
    h = x @ w1 + b1
    h = h * bn_scale + bn_shift
    h = jnp.where(h >= 0.0, h, LEAKY_SLOPE * h)
    return h @ w2 + b2


if __name__ == "__main__":
    key = jax.random.PRNGKey(0)
    kx, kp = jax.random.split(key)

    # Small, deliberately non-128-aligned shapes to exercise the padding paths;
    # N > tile_n so the grid has 2 steps (v7x dual-TC sharding path).
    N, input_dim, linear, class_num = 300, 200, 120, 10
    x = jax.random.normal(kx, (N, input_dim), jnp.float32)  # layout: [N, D_in]
    params = init_params(kp, input_dim, linear, class_num)

    out = classblock_forward(x, *params, tile_n=256)
    out = jax.block_until_ready(out)

    ref = reference_forward(x, *params)
    assert out.shape == (N, class_num)
    # bf16 MXU inputs with fp32 accumulation -> looser tolerance than pure fp32.
    max_err = float(jnp.max(jnp.abs(out - ref)))
    assert jnp.allclose(out, ref, atol=5e-3, rtol=5e-2), max_err

    print("KERNEL_OK")
</pallas_src>

<mosaic_0001>
module attributes {stable_mosaic.version = 11 : i64} {
  func.func @classblock_kernel(%arg0: i32, %arg1: memref<256x256xbf16, #tpu.memory_space<vmem>>, %arg2: memref<256x128xbf16, #tpu.memory_space<vmem>>, %arg3: memref<1x128xf32, #tpu.memory_space<vmem>>, %arg4: memref<128x128xbf16, #tpu.memory_space<vmem>>, %arg5: memref<1x128xf32, #tpu.memory_space<vmem>>, %arg6: memref<256x128xf32, #tpu.memory_space<vmem>>) attributes {dimension_semantics = [#tpu.dimension_semantics<parallel>], iteration_bounds = array<i64: 2>, scalar_prefetch = 0 : i64, scratch_operands = 0 : i64, tpu.core_type = #tpu.core_type<tc>, window_params = [{transform_indices = @transform_0, window_bounds = array<i64: 256, 256>}, {pipeline_mode = #tpu.pipeline_mode<synchronous>, transform_indices = @transform_1, window_bounds = array<i64: 256, 128>}, {pipeline_mode = #tpu.pipeline_mode<synchronous>, transform_indices = @transform_2, window_bounds = array<i64: 1, 128>}, {pipeline_mode = #tpu.pipeline_mode<synchronous>, transform_indices = @transform_3, window_bounds = array<i64: 128, 128>}, {pipeline_mode = #tpu.pipeline_mode<synchronous>, transform_indices = @transform_4, window_bounds = array<i64: 1, 128>}, {transform_indices = @transform_5, window_bounds = array<i64: 256, 128>}]} {
    %c0 = arith.constant 0 : index
    %c0_0 = arith.constant 0 : index
    %0 = vector.load %arg1[%c0, %c0_0] : memref<256x256xbf16, #tpu.memory_space<vmem>>, vector<256x256xbf16>
    %c0_1 = arith.constant 0 : index
    %c0_2 = arith.constant 0 : index
    %1 = vector.load %arg2[%c0_1, %c0_2] : memref<256x128xbf16, #tpu.memory_space<vmem>>, vector<256x128xbf16>
    %cst = arith.constant dense<0.000000e+00> : vector<256x128xf32>
    %2 = tpu.matmul %0, %1, %cst {dimension_numbers = #tpu.dot_dimension_numbers<[1], [0], [0], [1], [0, 0, 1, 1], [], []>} : vector<256x256xbf16>, vector<256x128xbf16>, vector<256x128xf32> -> vector<256x128xf32>
    %c0_3 = arith.constant 0 : index
    %c0_4 = arith.constant 0 : index
    %3 = vector.load %arg3[%c0_3, %c0_4] : memref<1x128xf32, #tpu.memory_space<vmem>>, vector<1x128xf32>
    %4 = vector.broadcast %3 : vector<1x128xf32> to vector<256x128xf32>
    %5 = arith.addf %2, %4 : vector<256x128xf32>
    %cst_5 = arith.constant 0.000000e+00 : f32
    %6 = vector.broadcast %cst_5 : f32 to vector<256x128xf32>
    %7 = arith.cmpf oge, %5, %6 : vector<256x128xf32>
    %cst_6 = arith.constant 1.000000e-01 : f32
    %8 = vector.broadcast %cst_6 : f32 to vector<256x128xf32>
    %9 = arith.mulf %8, %5 : vector<256x128xf32>
    %10 = arith.select %7, %5, %9 : vector<256x128xi1>, vector<256x128xf32>
    %11 = arith.truncf %10 : vector<256x128xf32> to vector<256x128xbf16>
    %c0_7 = arith.constant 0 : index
    %c0_8 = arith.constant 0 : index
    %12 = vector.load %arg4[%c0_7, %c0_8] : memref<128x128xbf16, #tpu.memory_space<vmem>>, vector<128x128xbf16>
    %cst_9 = arith.constant dense<0.000000e+00> : vector<256x128xf32>
    %13 = tpu.matmul %11, %12, %cst_9 {dimension_numbers = #tpu.dot_dimension_numbers<[1], [0], [0], [1], [0, 0, 1, 1], [], []>} : vector<256x128xbf16>, vector<128x128xbf16>, vector<256x128xf32> -> vector<256x128xf32>
    %c0_10 = arith.constant 0 : index
    %c0_11 = arith.constant 0 : index
    %14 = vector.load %arg5[%c0_10, %c0_11] : memref<1x128xf32, #tpu.memory_space<vmem>>, vector<1x128xf32>
    %15 = vector.broadcast %14 : vector<1x128xf32> to vector<256x128xf32>
    %16 = arith.addf %13, %15 : vector<256x128xf32>
    %c0_12 = arith.constant 0 : index
    %c0_13 = arith.constant 0 : index
    %17 = vector.load %arg6[%c0_12, %c0_13] : memref<256x128xf32, #tpu.memory_space<vmem>>, vector<256x128xf32>
    tpu.vector_store %arg6[%c0_12, %c0_13], %16 {strides = array<i32>} : memref<256x128xf32, #tpu.memory_space<vmem>>, vector<256x128xf32>,
    return
  }
  func.func @transform_0(%arg0: i32) -> (i32, i32) {
    %c0_i32 = arith.constant 0 : i32
    %c0_i32_0 = arith.constant 0 : i32
    return %arg0, %c0_i32 : i32, i32
  }
  func.func @transform_1(%arg0: i32) -> (i32, i32) {
    %c0_i32 = arith.constant 0 : i32
    %c0_i32_0 = arith.constant 0 : i32
    %c0_i32_1 = arith.constant 0 : i32
    return %c0_i32, %c0_i32_0 : i32, i32
  }
  func.func @transform_2(%arg0: i32) -> (i32, i32) {
    %c0_i32 = arith.constant 0 : i32
    %c0_i32_0 = arith.constant 0 : i32
    %c0_i32_1 = arith.constant 0 : i32
    return %c0_i32, %c0_i32_0 : i32, i32
  }
  func.func @transform_3(%arg0: i32) -> (i32, i32) {
    %c0_i32 = arith.constant 0 : i32
    %c0_i32_0 = arith.constant 0 : i32
    %c0_i32_1 = arith.constant 0 : i32
    return %c0_i32, %c0_i32_0 : i32, i32
  }
  func.func @transform_4(%arg0: i32) -> (i32, i32) {
    %c0_i32 = arith.constant 0 : i32
    %c0_i32_0 = arith.constant 0 : i32
    %c0_i32_1 = arith.constant 0 : i32
    return %c0_i32, %c0_i32_0 : i32, i32
  }
  func.func @transform_5(%arg0: i32) -> (i32, i32) {
    %c0_i32 = arith.constant 0 : i32
    %c0_i32_0 = arith.constant 0 : i32
    return %arg0, %c0_i32 : i32, i32
  }
}

</mosaic_0001>

<bundles_post_ra>
// kernel: classblock_forward.1
= control target key start
LH: loop header
LB: loop body
LE: loop exit
PB: predicated region body
PF: predicated region fallthrough
CT: control target
= control target key end

     0   :  { %s1541_s18 = smov 0   ;;  %s1815_s0 = inlined_call_operand.vmem [shape: bf16[512,256], index: 0, kind: input, shape index: {}]   ;;  %s1816_s1 = inlined_call_operand.vmem [shape: bf16[256,128], index: 1, kind: input, shape index: {}]   ;;  %s1817_s2 = inlined_call_operand.vmem [shape: f32[1,128], index: 2, kind: input, shape index: {}]   ;;  %s1818_s3 = inlined_call_operand.vmem [shape: bf16[128,128], index: 3, kind: input, shape index: {}]   ;;  %s1819_s4 = inlined_call_operand.vmem [shape: f32[1,128], index: 4, kind: input, shape index: {}]   ;;  %s1820_s5 = inlined_call_operand.vmem [shape: f32[512,128], index: 5, kind: output, shape index: {}]  }
   0x1 LB: > { %s1152_s19 = sadd.s32 4294967295, %s1509_s18   ;;  %p1156_p0 = scmp.ge.s32.totalorder %s1509_s18, 1  ;;  %s1509_s18 = sphi %s1541_s18, %s15_s18  }
   0x2   : > { %p189_p1 = scmp.lt.s32.totalorder %s1509_s18, 3 }
   0x4   : > { %p190_p2 = pnand %p1156_p0, %p189_p1 }
   0x5   : > { %v1431_v0 = vld [vmem:[%s1816_s1 + $0x40] sm:$0xff] (!%p190_p2)   ;;  %s1157_s22 = sshll.u32 (!%p190_p2), %s1152_s19, 5  ;;  %v1433_v2 = vld [vmem:[%s1816_s1 + $0x48] sm:$0xff] (!%p190_p2)   ;;  %v1435_v4 = vld [vmem:[%s1816_s1 + $0x50] sm:$0xff] (!%p190_p2)  }
   0x6   : > { %193 = sbr.rel (%p190_p2) target bundleno = 584 (0x248), region = 40  ;;  %v1432_v1 = vld [vmem:[%s1816_s1] sm:$0xff] (!%p190_p2)   ;;  %1223 = vmatprep.subr.bf16.mxu0 (!%p190_p2), %v1431_v0  ;;  %1407 = vmatprep.subr.bf16.mxu1 (!%p190_p2), %v1431_v0  ;;  %v1434_v3 = vld [vmem:[%s1816_s1 + $0x8] sm:$0xff] (!%p190_p2)   ;;  %p219_p3 = scmp.lt.s32.totalorder (!%p190_p2), %s1157_s22, 63  ;;  %v1436_v5 = vld [vmem:[%s1816_s1 + $0x10] sm:$0xff] (!%p190_p2)  }
   0x7   : > { %1224 = vmatpush3.bf16.msra.mxu0 (!%p190_p2), %v1432_v1  ;;  %1415 = vmatpush3.bf16.msra.mxu1 (!%p190_p2), %v1432_v1  ;;  %v1437_v6 = vld [vmem:[%s1816_s1 + $0x58] sm:$0xff] (!%p190_p2)   ;;  %v1439_v8 = vld [vmem:[%s1816_s1 + $0x60] sm:$0xff] (!%p190_p2)   ;;  %v1441_v10 = vld [vmem:[%s1816_s1 + $0x68] sm:$0xff] (!%p190_p2)  }
   0x8   : > { %1225 = vmatprep.subr.bf16.mxu0 (!%p190_p2), %v1433_v2  ;;  %1408 = vmatprep.subr.bf16.mxu1 (!%p190_p2), %v1433_v2  ;;  %v1438_v7 = vld [vmem:[%s1816_s1 + $0x18] sm:$0xff] (!%p190_p2)   ;;  %v1440_v9 = vld [vmem:[%s1816_s1 + $0x20] sm:$0xff] (!%p190_p2)   ;;  %v1442_v12 = vld [vmem:[%s1816_s1 + $0x28] sm:$0xff] (!%p190_p2)  }
   0x9   : > { %v1443_v13 = vld [vmem:[%s1816_s1 + $0x70] sm:$0xff] (!%p190_p2)   ;;  %v1445_v15 = vld [vmem:[%s1816_s1 + $0x78] sm:$0xff] (!%p190_p2)   ;;  %v1495_v26 = vld [vmem:[%s1818_s3] sm:$0xff] (!%p190_p2)  }
   0xa   : > { %v1444_v14 = vld [vmem:[%s1816_s1 + $0x30] sm:$0xff] (!%p190_p2)   ;;  %v1446_v16 = vld [vmem:[%s1816_s1 + $0x38] sm:$0xff] (!%p190_p2)   ;;  %v1496_v27 = vld [vmem:[%s1818_s3 + $0x8] sm:$0xff] (!%p190_p2)  }
   0xb   : > { %1226 = vmatpush3.bf16.msra.mxu0 (!%p190_p2), %v1434_v3  ;;  %1416 = vmatpush3.bf16.msra.mxu1 (!%p190_p2), %v1434_v3  ;;  %v1497_v28 = vld [vmem:[%s1818_s3 + $0x10] sm:$0xff] (!%p190_p2)   ;;  %v1498_v50 = vld [vmem:[%s1818_s3 + $0x18] sm:$0xff] (!%p190_p2)   ;;  %v1499_v52 = vld [vmem:[%s1818_s3 + $0x20] sm:$0xff] (!%p190_p2)  }
   0xc   : > { %1227 = vmatprep.subr.bf16.mxu0 (!%p190_p2), %v1435_v4  ;;  %1409 = vmatprep.subr.bf16.mxu1 (!%p190_p2), %v1435_v4  ;;  %v1500_v53 = vld [vmem:[%s1818_s3 + $0x28] sm:$0xff] (!%p190_p2)   ;;  %v1501_v54 = vld [vmem:[%s1818_s3 + $0x30] sm:$0xff] (!%p190_p2)   ;;  %v1502_v55 = vld [vmem:[%s1818_s3 + $0x38] sm:$0xff] (!%p190_p2)  }
   0xd   : > { %s1822_s22 = smov (!%p219_p3, %s1157_s22), 63  ;;  %v1666_v57 = vld [vmem:[%s1817_s2] ss:$0 sm:$0xff] }
   0xe   : > { %s1222_s12 = sshll.u32 %s1822_s22, 3 }
   0xf   : > { %1228 = vmatpush3.bf16.msra.mxu0 %v1436_v5  ;;  %1417 = vmatpush3.bf16.msra.mxu1 %v1436_v5  ;;  %s1584_s17 = scalar_lea.vmem %s1815_s0, %s1222_s12  ;;  %s1746_s9 = scalar_lea.vmem %s1820_s5, %s1222_s12 }
  0x10   : > { %1229 = vmatprep.subr.bf16.mxu0 %v1437_v6  ;;  %1410 = vmatprep.subr.bf16.mxu1 %v1437_v6  ;;  %v1449_v11 = vld [vmem:[%s1584_s17 + $0x4] ss:$8 sps:$4 sm:$0xff]   ;;  %v1447_v17 = vld [vmem:[%s1584_s17] ss:$8 sps:$4 sm:$0xff]   ;;  %v1450_v19 = vld [vmem:[%s1584_s17 + $0x14] ss:$8 sps:$4 sm:$0xff]  }
  0x11   : > { %591 = vmatprep.mubr.bf16.mxu0 %v1449_v11  ;;  %v1479_v18 = vld [vmem:[%s1584_s17 + $0xc4] ss:$8 sps:$4 sm:$0xff]   ;;  %v1477_v20 = vld [vmem:[%s1584_s17 + $0xc0] ss:$8 sps:$4 sm:$0xff]   ;;  %v1483_v21 = vld [vmem:[%s1584_s17 + $0xd4] ss:$8 sps:$4 sm:$0xff]  }
  0x12   : > { %687 = vmatprep.mubr.bf16.mxu1 %v1479_v18  ;;  %v1452_v22 = vld [vmem:[%s1584_s17 + $0x10] ss:$8 sps:$4 sm:$0xff]   ;;  %v1453_v23 = vld [vmem:[%s1584_s17 + $0x24] ss:$8 sps:$4 sm:$0xff]   ;;  %v1455_v29 = vld [vmem:[%s1584_s17 + $0x20] ss:$8 sps:$4 sm:$0xff]  }
  0x13   : > { %1230 = vmatpush3.bf16.msra.mxu0 %v1438_v7  ;;  %1418 = vmatpush3.bf16.msra.mxu1 %v1438_v7  ;;  %v1485_v24 = vld [vmem:[%s1584_s17 + $0xd0] ss:$8 sps:$4 sm:$0xff]   ;;  %v1489_v25 = vld [vmem:[%s1584_s17 + $0xe4] ss:$8 sps:$4 sm:$0xff]   ;;  %v1456_v30 = vld [vmem:[%s1584_s17 + $0x34] ss:$8 sps:$4 sm:$0xff]  }
  0x14   : > { %1231 = vmatprep.subr.bf16.mxu0 %v1439_v8  ;;  %1411 = vmatprep.subr.bf16.mxu1 %v1439_v8  ;;  %v1491_v31 = vld [vmem:[%s1584_s17 + $0xe0] ss:$8 sps:$4 sm:$0xff]   ;;  %v1492_v32 = vld [vmem:[%s1584_s17 + $0xf4] ss:$8 sps:$4 sm:$0xff]   ;;  %v1458_v33 = vld [vmem:[%s1584_s17 + $0x30] ss:$8 sps:$4 sm:$0xff]  }
  0x15   : > { %v1459_v34 = vld [vmem:[%s1584_s17 + $0x44] ss:$8 sps:$4 sm:$0xff]   ;;  %v1494_v35 = vld [vmem:[%s1584_s17 + $0xf0] ss:$8 sps:$4 sm:$0xff]   ;;  %v1461_v36 = vld [vmem:[%s1584_s17 + $0x40] ss:$8 sps:$4 sm:$0xff]  }
  0x16   : > { %v1462_v37 = vld [vmem:[%s1584_s17 + $0x54] ss:$8 sps:$4 sm:$0xff]   ;;  %v1464_v38 = vld [vmem:[%s1584_s17 + $0x50] ss:$8 sps:$4 sm:$0xff]   ;;  %v1465_v39 = vld [vmem:[%s1584_s17 + $0x64] ss:$8 sps:$4 sm:$0xff]  }
  0x17   : > { %1232 = vmatpush3.bf16.msra.mxu0 %v1440_v9  ;;  %1419 = vmatpush3.bf16.msra.mxu1 %v1440_v9  ;;  %v1467_v40 = vld [vmem:[%s1584_s17 + $0x60] ss:$8 sps:$4 sm:$0xff]   ;;  %v1468_v41 = vld [vmem:[%s1584_s17 + $0x74] ss:$8 sps:$4 sm:$0xff]   ;;  %v1470_v42 = vld [vmem:[%s1584_s17 + $0x70] ss:$8 sps:$4 sm:$0xff]  }
  0x18   : > { %1233 = vmatprep.subr.bf16.mxu0 %v1441_v10  ;;  %1412 = vmatprep.subr.bf16.mxu1 %v1441_v10  ;;  %v1471_v43 = vld [vmem:[%s1584_s17 + $0x84] ss:$8 sps:$4 sm:$0xff]   ;;  %v1473_v44 = vld [vmem:[%s1584_s17 + $0x80] ss:$8 sps:$4 sm:$0xff]   ;;  %v1474_v45 = vld [vmem:[%s1584_s17 + $0x94] ss:$8 sps:$4 sm:$0xff]  }
  0x19   : > { %v1476_v46 = vld [vmem:[%s1584_s17 + $0x90] ss:$8 sps:$4 sm:$0xff]   ;;  %v1480_v47 = vld [vmem:[%s1584_s17 + $0xa4] ss:$8 sps:$4 sm:$0xff]   ;;  %v1482_v48 = vld [vmem:[%s1584_s17 + $0xa0] ss:$8 sps:$4 sm:$0xff]  }
  0x1a   : > { %v1486_v49 = vld [vmem:[%s1584_s17 + $0xb4] ss:$8 sps:$4 sm:$0xff]   ;;  %v1488_v51 = vld [vmem:[%s1584_s17 + $0xb0] ss:$8 sps:$4 sm:$0xff]  }
  0x1b   : > { %1234 = vmatpush3.bf16.msra.mxu0 %v1442_v12  ;;  %1420 = vmatpush3.bf16.msra.mxu1 %v1442_v12 }
  0x1c   : > { %1235 = vmatprep.subr.bf16.mxu0 %v1443_v13  ;;  %1413 = vmatprep.subr.bf16.mxu1 %v1443_v13 }
  0x1f   : > { %1236 = vmatpush3.bf16.msra.mxu0 %v1444_v14  ;;  %1421 = vmatpush3.bf16.msra.mxu1 %v1444_v14 }
  0x20   : > { %1237 = vmatprep.subr.bf16.mxu0 %v1445_v15  ;;  %1414 = vmatprep.subr.bf16.mxu1 %v1445_v15 }
  0x23   : > { %1238 = vmatpush3.bf16.msra.mxu0 %v1446_v16  ;;  %1422 = vmatpush3.bf16.msra.mxu1 %v1446_v16 }
  0x24   : > { %1359 = vmatprep.subr.bf16.mxu1 %v1495_v26 }
  0x26   : > { %592 = vmatmul.mubr.bf16.vlgmr.msra.gmra.mrb[0].mxu0 %v1447_v17  ;;  %688 = vmatmul.mubr.bf16.vlgmr.msra.gmra.mrb[0].mxu1 %v1477_v20 }
  0x27   : > { %599 = vmatprep.mubr.bf16.mxu0 %v1450_v19  ;;  %695 = vmatprep.mubr.bf16.mxu1 %v1483_v21 }
  0x28   : > { %1360 = vmatpush3.bf16.msra.mxu1 %v1495_v26 }
  0x29   : > { %1361 = vmatprep.subr.bf16.mxu1 %v1496_v27 }
  0x2c   : > { %1362 = vmatpush3.bf16.msra.mxu1 %v1496_v27 }
  0x2d   : > { %1363 = vmatprep.subr.bf16.mxu1 %v1497_v28 }
  0x2e   : > { %600 = vmatmul.mubr.bf16.gmra.mrb[4].mxu0 %v1452_v22  ;;  %696 = vmatmul.mubr.bf16.gmra.mrb[4].mxu1 %v1485_v24 }
  0x2f   : > { %607 = vmatprep.mubr.bf16.mxu0 %v1453_v23  ;;  %703 = vmatprep.mubr.bf16.mxu1 %v1489_v25 }
  0x30   : > { %1364 = vmatpush3.bf16.msra.mxu1 %v1497_v28 }
  0x31   : > { %1365 = vmatprep.subr.bf16.mxu1 %v1498_v50 }
  0x34   : > { %1366 = vmatpush3.bf16.msra.mxu1 %v1498_v50 }
  0x35   : > { %1367 = vmatprep.subr.bf16.mxu1 %v1499_v52 }
  0x36   : > { %608 = vmatmul.mubr.bf16.gmra.mrb[8].mxu0 %v1455_v29  ;;  %704 = vmatmul.mubr.bf16.gmra.mrb[8].mxu1 %v1491_v31 }
  0x37   : > { %615 = vmatprep.mubr.bf16.mxu0 %v1456_v30  ;;  %711 = vmatprep.mubr.bf16.mxu1 %v1492_v32 }
  0x38   : > { %1368 = vmatpush3.bf16.msra.mxu1 %v1499_v52 }
  0x39   : > { %1369 = vmatprep.subr.bf16.mxu1 %v1500_v53 }
  0x3c   : > { %1370 = vmatpush3.bf16.msra.mxu1 %v1500_v53 }
  0x3d   : > { %1371 = vmatprep.subr.bf16.mxu1 %v1501_v54 }
  0x3e   : > { %616 = vmatmul.mubr.bf16.gmra.mrb[12].mxu0 %v1458_v33  ;;  %712 = vmatmul.mubr.bf16.gmra.mrb[12].mxu1 %v1494_v35 }
  0x3f   : > { %623 = vmatprep.mubr.bf16.mxu0 %v1459_v34 }
  0x40   : > { %1372 = vmatpush3.bf16.msra.mxu1 %v1501_v54 }
  0x41   : > { %1373 = vmatprep.subr.bf16.mxu1 %v1502_v55 }
  0x44   : > { %1374 = vmatpush3.bf16.msra.mxu1 %v1502_v55 }
  0x46   : > { %624 = vmatmul.mubr.bf16.gmra.mrb[16].mxu0 %v1461_v36 }
  0x47   : > { %631 = vmatprep.mubr.bf16.mxu0 %v1462_v37 }
  0x4e   : > { %632 = vmatmul.mubr.bf16.gmra.mrb[20].mxu0 %v1464_v38 }
  0x4f   : > { %639 = vmatprep.mubr.bf16.mxu0 %v1465_v39 }
  0x56   : > { %640 = vmatmul.mubr.bf16.gmra.mrb[24].mxu0 %v1467_v40 }
  0x57   : > { %647 = vmatprep.mubr.bf16.mxu0 %v1468_v41 }
  0x5e   : > { %648 = vmatmul.mubr.bf16.gmra.mrb[28].mxu0 %v1470_v42 }
  0x5f   : > { %655 = vmatprep.mubr.bf16.mxu0 %v1471_v43 }
  0x66   : > { %656 = vmatmul.mubr.bf16.gmra.mrb[32].mxu0 %v1473_v44 }
  0x67   : > { %663 = vmatprep.mubr.bf16.mxu0 %v1474_v45 }
  0x6e   : > { %664 = vmatmul.mubr.bf16.gmra.mrb[36].mxu0 %v1476_v46 }
  0x6f   : > { %671 = vmatprep.mubr.bf16.mxu0 %v1480_v47 }
  0x76   : > { %672 = vmatmul.mubr.bf16.gmra.mrb[40].mxu0 %v1482_v48 }
  0x77   : > { %679 = vmatprep.mubr.bf16.mxu0 %v1486_v49 }
  0x7e   : > { %680 = vmatmul.mubr.bf16.gmra.mrb[44].mxu0 %v1488_v51 }
  0xf9   : > { %v1239_v56 = vpop.f32.mrb[0].mxu0  ;;  %v1311_v59 = vpop.f32.mrb[0].mxu1 }
  0xfa   : > { %v1240_v58 = vpop.f32.mrb[1].mxu0  ;;  %v1312_v62 = vpop.f32.mrb[1].mxu1 }
  0xfb   : > { %v1241_v60 = vadd.f32 %v1240_v58, %v1239_v56  ;;  %v1242_v61 = vpop.f32.mrb[2].mxu0  ;;  %v1313_v0 = vadd.f32 %v1312_v62, %v1311_v59  ;;  %v1314_v1 = vpop.f32.mrb[2].mxu1 }
  0xfc   : > { %v1243_v63 = vpop.f32.mrb[3].mxu0  ;;  %v1315_v4 = vpop.f32.mrb[3].mxu1 }
  0xfd   : > { %v594_v2 = vadd.f32 %v1241_v60, %v1666_v57  ;;  %v1244_v3 = vadd.f32 %v1243_v63, %v1242_v61  ;;  %v690_v5 = vadd.f32 %v1313_v0, %v1666_v57  ;;  %v1316_v6 = vadd.f32 %v1315_v4, %v1314_v1 }
  0xff   : > { %v752_v7 = vmul.f32 0.1, %v594_v2  ;;  %v597_v8 = vadd.f32 %v1244_v3, %v1666_v57  ;;  %vm720_vm0 = vcmp.ge.f32.partialorder %v594_v2, 0.0  ;;  %vm744_vm1 = vcmp.ge.f32.partialorder %v690_v5, 0.0 }
 0x100   : > { %v776_v9 = vmul.f32 0.1, %v690_v5  ;;  %v693_v10 = vadd.f32 %v1316_v6, %v1666_v57 }
 0x101   : > { %vm721_vm2 = vcmp.ge.f32.partialorder %v597_v8, 0.0  ;;  %v753_v11 = vmul.f32 0.1, %v597_v8  ;;  %v1245_v12 = vpop.f32.mrb[4].mxu0  ;;  %v1317_v15 = vpop.f32.mrb[4].mxu1  ;;  %v784_v19 = vsel %vm720_vm0, %v594_v2, %v752_v7 }
 0x102   : > { %v1246_v13 = vpop.f32.mrb[5].mxu0  ;;  %vm745_vm3 = vcmp.ge.f32.partialorder %v693_v10, 0.0  ;;  %v777_v14 = vmul.f32 0.1, %v693_v10  ;;  %v1672_v16 = vsel %vm744_vm1, %v690_v5, %v776_v9  ;;  %v1318_v21 = vpop.f32.mrb[5].mxu1 }
 0x103   : > { %v1247_v17 = vadd.f32 %v1246_v13, %v1245_v12  ;;  %v1248_v18 = vpop.f32.mrb[6].mxu0  ;;  %v785_v20 = vsel %vm721_vm2, %v597_v8, %v753_v11  ;;  %v1319_v24 = vadd.f32 %v1318_v21, %v1317_v15  ;;  %v1320_v25 = vpop.f32.mrb[6].mxu1 }
 0x104   : > { %v1249_v22 = vpop.f32.mrb[7].mxu0  ;;  %v816_v23 = vpack.c.bf16 %v785_v20, %v784_v19  ;;  %v1674_v26 = vsel %vm745_vm3, %v693_v10, %v777_v14  ;;  %v1321_v29 = vpop.f32.mrb[7].mxu1 }
 0x105   : > { %v602_v27 = vadd.f32 %v1247_v17, %v1666_v57  ;;  %v1250_v28 = vadd.f32 %v1249_v22, %v1248_v18  ;;  %v828_v30 = vpack.c.bf16 %v1674_v26, %v1672_v16  ;;  %v698_v31 = vadd.f32 %v1319_v24, %v1666_v57 }
 0x106   : > { %1375 = vmatprep.mubr.bf16.mxu1 %v816_v23  ;;  %v1322_v32 = vadd.f32 %v1321_v29, %v1320_v25 }
 0x107   : > { %v754_v33 = vmul.f32 0.1, %v602_v27  ;;  %v605_v34 = vadd.f32 %v1250_v28, %v1666_v57  ;;  %vm722_vm4 = vcmp.ge.f32.partialorder %v602_v27, 0.0  ;;  %vm746_vm5 = vcmp.ge.f32.partialorder %v698_v31, 0.0 }
 0x108   : > { %v778_v35 = vmul.f32 0.1, %v698_v31  ;;  %v701_v36 = vadd.f32 %v1322_v32, %v1666_v57 }
 0x109   : > { %vm723_vm6 = vcmp.ge.f32.partialorder %v605_v34, 0.0  ;;  %v755_v37 = vmul.f32 0.1, %v605_v34  ;;  %v1251_v38 = vpop.f32.mrb[8].mxu0  ;;  %v1323_v41 = vpop.f32.mrb[8].mxu1  ;;  %v786_v43 = vsel %vm722_vm4, %v602_v27, %v754_v33 }
 0x10a   : > { %v1252_v39 = vpop.f32.mrb[9].mxu0  ;;  %vm747_vm7 = vcmp.ge.f32.partialorder %v701_v36, 0.0  ;;  %v779_v40 = vmul.f32 0.1, %v701_v36  ;;  %v1682_v42 = vsel %vm746_vm5, %v698_v31, %v778_v35  ;;  %v1324_v47 = vpop.f32.mrb[9].mxu1 }
 0x10b   : > { %v787_v44 = vsel %vm723_vm6, %v605_v34, %v755_v37  ;;  %v1253_v45 = vadd.f32 %v1252_v39, %v1251_v38  ;;  %v1254_v46 = vpop.f32.mrb[10].mxu0  ;;  %v1325_v50 = vadd.f32 %v1324_v47, %v1323_v41  ;;  %v1326_v51 = vpop.f32.mrb[10].mxu1 }
 0x10c   : > { %v817_v48 = vpack.c.bf16 %v787_v44, %v786_v43  ;;  %v1255_v49 = vpop.f32.mrb[11].mxu0  ;;  %v1684_v52 = vsel %vm747_vm7, %v701_v36, %v779_v40  ;;  %v1327_v55 = vpop.f32.mrb[11].mxu1 }
 0x10d   : > { %v610_v53 = vadd.f32 %v1253_v45, %v1666_v57  ;;  %v1256_v54 = vadd.f32 %v1255_v49, %v1254_v46  ;;  %v829_v56 = vpack.c.bf16 %v1684_v52, %v1682_v42  ;;  %v706_v58 = vadd.f32 %v1325_v50, %v1666_v57 }
 0x10e   : > { %1376 = vmatmul.mubr.bf16.vlgmr.msra.gmra.mrb[16].mxu1 %v817_v48  ;;  %v1328_v59 = vadd.f32 %v1327_v55, %v1326_v51 }
 0x10f   : > { %v756_v60 = vmul.f32 0.1, %v610_v53  ;;  %v613_v61 = vadd.f32 %v1256_v54, %v1666_v57  ;;  %vm724_vm8 = vcmp.ge.f32.partialorder %v610_v53, 0.0  ;;  %vm748_vm9 = vcmp.ge.f32.partialorder %v706_v58, 0.0 }
 0x110   : > { %v780_v62 = vmul.f32 0.1, %v706_v58  ;;  %v709_v63 = vadd.f32 %v1328_v59, %v1666_v57 }
 0x111   : > { %vm725_vm10 = vcmp.ge.f32.partialorder %v613_v61, 0.0  ;;  %v757_v0 = vmul.f32 0.1, %v613_v61  ;;  %v1257_v1 = vpop.f32.mrb[12].mxu0  ;;  %v1329_v4 = vpop.f32.mrb[12].mxu1  ;;  %v788_v8 = vsel %vm724_vm8, %v610_v53, %v756_v60 }
 0x112   : > { %v1258_v2 = vpop.f32.mrb[13].mxu0  ;;  %vm749_vm11 = vcmp.ge.f32.partialorder %v709_v63, 0.0  ;;  %v781_v3 = vmul.f32 0.1, %v709_v63  ;;  %v1692_v5 = vsel %vm748_vm9, %v706_v58, %v780_v62  ;;  %v1330_v10 = vpop.f32.mrb[13].mxu1 }
 0x113   : > { %v1259_v6 = vadd.f32 %v1258_v2, %v1257_v1  ;;  %v1260_v7 = vpop.f32.mrb[14].mxu0  ;;  %v789_v9 = vsel %vm725_vm10, %v613_v61, %v757_v0  ;;  %v1331_v13 = vadd.f32 %v1330_v10, %v1329_v4  ;;  %v1332_v14 = vpop.f32.mrb[14].mxu1 }
 0x114   : > { %v1261_v11 = vpop.f32.mrb[15].mxu0  ;;  %v818_v12 = vpack.c.bf16 %v789_v9, %v788_v8  ;;  %v1694_v15 = vsel %vm749_vm11, %v709_v63, %v781_v3  ;;  %v1333_v19 = vpop.f32.mrb[15].mxu1 }
 0x115   : > { %v618_v17 = vadd.f32 %v1259_v6, %v1666_v57  ;;  %v1262_v18 = vadd.f32 %v1261_v11, %v1260_v7  ;;  %v830_v20 = vpack.c.bf16 %v1694_v15, %v1692_v5  ;;  %v714_v21 = vadd.f32 %v1331_v13, %v1666_v57 }
 0x116   : > { %1379 = vmatprep.mubr.bf16.mxu1 %v818_v12  ;;  %v1334_v22 = vadd.f32 %v1333_v19, %v1332_v14 }
 0x117   : > { %v758_v23 = vmul.f32 0.1, %v618_v17  ;;  %v621_v24 = vadd.f32 %v1262_v18, %v1666_v57  ;;  %vm726_vm12 = vcmp.ge.f32.partialorder %v618_v17, 0.0  ;;  %vm750_vm13 = vcmp.ge.f32.partialorder %v714_v21, 0.0 }
 0x118   : > { %v782_v25 = vmul.f32 0.1, %v714_v21  ;;  %v717_v27 = vadd.f32 %v1334_v22, %v1666_v57 }
 0x119   : > { %vm727_vm14 = vcmp.ge.f32.partialorder %v621_v24, 0.0  ;;  %v759_v28 = vmul.f32 0.1, %v621_v24  ;;  %v1263_v29 = vpop.f32.mrb[16].mxu0  ;;  %v790_v36 = vsel %vm726_vm12, %v618_v17, %v758_v23 }
 0x11a   : > { %v1264_v31 = vpop.f32.mrb[17].mxu0  ;;  %vm751_vm15 = vcmp.ge.f32.partialorder %v717_v27, 0.0  ;;  %v783_v32 = vmul.f32 0.1, %v717_v27  ;;  %v1702_v33 = vsel %vm750_vm13, %v714_v21, %v782_v25 }
 0x11b   : > { %v1265_v34 = vadd.f32 %v1264_v31, %v1263_v29  ;;  %v1266_v35 = vpop.f32.mrb[18].mxu0  ;;  %v791_v37 = vsel %vm727_vm14, %v621_v24, %v759_v28 }
 0x11c   : > { %v1267_v38 = vpop.f32.mrb[19].mxu0  ;;  %v819_v39 = vpack.c.bf16 %v791_v37, %v790_v36  ;;  %v1704_v40 = vsel %vm751_vm15, %v717_v27, %v783_v32 }
 0x11d   : > { %v626_v41 = vadd.f32 %v1265_v34, %v1666_v57  ;;  %v1268_v43 = vadd.f32 %v1267_v38, %v1266_v35  ;;  %v831_v44 = vpack.c.bf16 %v1704_v40, %v1702_v33 }
 0x11e   : > { %1380 = vmatmul.mubr.bf16.gmra.mrb[20].mxu1 %v819_v39 }
 0x11f   : > { %v760_v45 = vmul.f32 0.1, %v626_v41  ;;  %v629_v46 = vadd.f32 %v1268_v43, %v1666_v57  ;;  %vm728_vm0 = vcmp.ge.f32.partialorder %v626_v41, 0.0 }
 0x121   : > { %vm729_vm1 = vcmp.ge.f32.partialorder %v629_v46, 0.0  ;;  %v761_v47 = vmul.f32 0.1, %v629_v46  ;;  %v1269_v48 = vpop.f32.mrb[20].mxu0  ;;  %v792_v53 = vsel %vm728_vm0, %v626_v41, %v760_v45 }
 0x122   : > { %v1270_v49 = vpop.f32.mrb[21].mxu0 }
 0x123   : > { %v1271_v50 = vadd.f32 %v1270_v49, %v1269_v48  ;;  %v1272_v51 = vpop.f32.mrb[22].mxu0  ;;  %v793_v54 = vsel %vm729_vm1, %v629_v46, %v761_v47 }
 0x124   : > { %v1273_v55 = vpop.f32.mrb[23].mxu0  ;;  %v820_v58 = vpack.c.bf16 %v793_v54, %v792_v53 }
 0x125   : > { %v634_v59 = vadd.f32 %v1271_v50, %v1666_v57  ;;  %v1274_v60 = vadd.f32 %v1273_v55, %v1272_v51 }
 0x126   : > { %1383 = vmatprep.mubr.bf16.mxu1 %v820_v58 }
 0x127   : > { %v762_v61 = vmul.f32 0.1, %v634_v59  ;;  %v637_v62 = vadd.f32 %v1274_v60, %v1666_v57  ;;  %vm730_vm2 = vcmp.ge.f32.partialorder %v634_v59, 0.0 }
 0x129   : > { %vm731_vm3 = vcmp.ge.f32.partialorder %v637_v62, 0.0  ;;  %v763_v63 = vmul.f32 0.1, %v637_v62  ;;  %v1275_v0 = vpop.f32.mrb[24].mxu0  ;;  %v794_v4 = vsel %vm730_vm2, %v634_v59, %v762_v61 }
 0x12a   : > { %v1276_v1 = vpop.f32.mrb[25].mxu0 }
 0x12b   : > { %v1277_v2 = vadd.f32 %v1276_v1, %v1275_v0  ;;  %v1278_v3 = vpop.f32.mrb[26].mxu0  ;;  %v795_v6 = vsel %vm731_vm3, %v637_v62, %v763_v63 }
 0x12c   : > { %v1279_v7 = vpop.f32.mrb[27].mxu0  ;;  %v821_v8 = vpack.c.bf16 %v795_v6, %v794_v4 }
 0x12d   : > { %v642_v9 = vadd.f32 %v1277_v2, %v1666_v57  ;;  %v1280_v10 = vadd.f32 %v1279_v7, %v1278_v3 }
 0x12e   : > { %1384 = vmatmul.mubr.bf16.gmra.mrb[24].mxu1 %v821_v8 }
 0x12f   : > { %v764_v11 = vmul.f32 0.1, %v642_v9  ;;  %v645_v12 = vadd.f32 %v1280_v10, %v1666_v57  ;;  %vm732_vm4 = vcmp.ge.f32.partialorder %v642_v9, 0.0 }
 0x131   : > { %vm733_vm5 = vcmp.ge.f32.partialorder %v645_v12, 0.0  ;;  %v765_v13 = vmul.f32 0.1, %v645_v12  ;;  %v1281_v14 = vpop.f32.mrb[28].mxu0  ;;  %v796_v21 = vsel %vm732_vm4, %v642_v9, %v764_v11 }
 0x132   : > { %v1282_v17 = vpop.f32.mrb[29].mxu0 }
 0x133   : > { %v1283_v18 = vadd.f32 %v1282_v17, %v1281_v14  ;;  %v1284_v19 = vpop.f32.mrb[30].mxu0  ;;  %v797_v22 = vsel %vm733_vm5, %v645_v12, %v765_v13 }
 0x134   : > { %v1285_v23 = vpop.f32.mrb[31].mxu0  ;;  %v822_v24 = vpack.c.bf16 %v797_v22, %v796_v21 }
 0x135   : > { %v650_v25 = vadd.f32 %v1283_v18, %v1666_v57  ;;  %v1286_v27 = vadd.f32 %v1285_v23, %v1284_v19 }
 0x136   : > { %1387 = vmatprep.mubr.bf16.mxu1 %v822_v24 }
 0x137   : > { %v766_v28 = vmul.f32 0.1, %v650_v25  ;;  %v653_v29 = vadd.f32 %v1286_v27, %v1666_v57  ;;  %vm734_vm6 = vcmp.ge.f32.partialorder %v650_v25, 0.0 }
 0x139   : > { %vm735_vm7 = vcmp.ge.f32.partialorder %v653_v29, 0.0  ;;  %v767_v31 = vmul.f32 0.1, %v653_v29  ;;  %v1287_v32 = vpop.f32.mrb[32].mxu0  ;;  %v798_v37 = vsel %vm734_vm6, %v650_v25, %v766_v28 }
 0x13a   : > { %v1288_v34 = vpop.f32.mrb[33].mxu0 }
 0x13b   : > { %v1289_v35 = vadd.f32 %v1288_v34, %v1287_v32  ;;  %v1290_v36 = vpop.f32.mrb[34].mxu0  ;;  %v799_v38 = vsel %vm735_vm7, %v653_v29, %v767_v31 }
 0x13c   : > { %v1291_v39 = vpop.f32.mrb[35].mxu0  ;;  %v823_v41 = vpack.c.bf16 %v799_v38, %v798_v37 }
 0x13d   : > { %v658_v43 = vadd.f32 %v1289_v35, %v1666_v57  ;;  %v1292_v45 = vadd.f32 %v1291_v39, %v1290_v36 }
 0x13e   : > { %1388 = vmatmul.mubr.bf16.gmra.mrb[28].mxu1 %v823_v41 }
 0x13f   : > { %v768_v46 = vmul.f32 0.1, %v658_v43  ;;  %v661_v47 = vadd.f32 %v1292_v45, %v1666_v57  ;;  %vm736_vm8 = vcmp.ge.f32.partialorder %v658_v43, 0.0 }
 0x141   : > { %vm737_vm9 = vcmp.ge.f32.partialorder %v661_v47, 0.0  ;;  %v769_v48 = vmul.f32 0.1, %v661_v47  ;;  %v1293_v49 = vpop.f32.mrb[36].mxu0  ;;  %v800_v54 = vsel %vm736_vm8, %v658_v43, %v768_v46 }
 0x142   : > { %v1294_v50 = vpop.f32.mrb[37].mxu0 }
 0x143   : > { %v1295_v51 = vadd.f32 %v1294_v50, %v1293_v49  ;;  %v1296_v53 = vpop.f32.mrb[38].mxu0  ;;  %v801_v55 = vsel %vm737_vm9, %v661_v47, %v769_v48 }
 0x144   : > { %v1297_v58 = vpop.f32.mrb[39].mxu0  ;;  %v824_v59 = vpack.c.bf16 %v801_v55, %v800_v54 }
 0x145   : > { %v666_v60 = vadd.f32 %v1295_v51, %v1666_v57  ;;  %v1298_v61 = vadd.f32 %v1297_v58, %v1296_v53 }
 0x146   : > { %1391 = vmatprep.mubr.bf16.mxu1 %v824_v59 }
 0x147   : > { %v770_v62 = vmul.f32 0.1, %v666_v60  ;;  %v669_v63 = vadd.f32 %v1298_v61, %v1666_v57  ;;  %vm738_vm10 = vcmp.ge.f32.partialorder %v666_v60, 0.0 }
 0x149   : > { %vm739_vm11 = vcmp.ge.f32.partialorder %v669_v63, 0.0  ;;  %v771_v0 = vmul.f32 0.1, %v669_v63  ;;  %v1299_v1 = vpop.f32.mrb[40].mxu0  ;;  %v802_v6 = vsel %vm738_vm10, %v666_v60, %v770_v62 }
 0x14a   : > { %v1300_v2 = vpop.f32.mrb[41].mxu0 }
 0x14b   : > { %v1301_v3 = vadd.f32 %v1300_v2, %v1299_v1  ;;  %v1302_v4 = vpop.f32.mrb[42].mxu0  ;;  %v803_v7 = vsel %vm739_vm11, %v669_v63, %v771_v0 }
 0x14c   : > { %v1303_v8 = vpop.f32.mrb[43].mxu0  ;;  %v825_v9 = vpack.c.bf16 %v803_v7, %v802_v6 }
 0x14d   : > { %v674_v10 = vadd.f32 %v1301_v3, %v1666_v57  ;;  %v1304_v11 = vadd.f32 %v1303_v8, %v1302_v4 }
 0x14e   : > { %1392 = vmatmul.mubr.bf16.gmra.mrb[32].mxu1 %v825_v9 }
 0x14f   : > { %v772_v12 = vmul.f32 0.1, %v674_v10  ;;  %v677_v13 = vadd.f32 %v1304_v11, %v1666_v57  ;;  %vm740_vm12 = vcmp.ge.f32.partialorder %v674_v10, 0.0 }
 0x151   : > { %vm741_vm13 = vcmp.ge.f32.partialorder %v677_v13, 0.0  ;;  %v773_v14 = vmul.f32 0.1, %v677_v13  ;;  %v1305_v17 = vpop.f32.mrb[44].mxu0  ;;  %v804_v22 = vsel %vm740_vm12, %v674_v10, %v772_v12 }
 0x152   : > { %v1306_v18 = vpop.f32.mrb[45].mxu0 }
 0x153   : > { %v1307_v19 = vadd.f32 %v1306_v18, %v1305_v17  ;;  %v1308_v21 = vpop.f32.mrb[46].mxu0  ;;  %v805_v23 = vsel %vm741_vm13, %v677_v13, %v773_v14 }
 0x154   : > { %v1309_v24 = vpop.f32.mrb[47].mxu0  ;;  %v826_v25 = vpack.c.bf16 %v805_v23, %v804_v22 }
 0x155   : > { %v682_v27 = vadd.f32 %v1307_v19, %v1666_v57  ;;  %v1310_v28 = vadd.f32 %v1309_v24, %v1308_v21 }
 0x156   : > { %1395 = vmatprep.mubr.bf16.mxu1 %v826_v25 }
 0x157   : > { %v774_v29 = vmul.f32 0.1, %v682_v27  ;;  %v685_v31 = vadd.f32 %v1310_v28, %v1666_v57  ;;  %vm742_vm14 = vcmp.ge.f32.partialorder %v682_v27, 0.0  ;;  %v1739_v57 = vld [vmem:[%s1819_s4] ss:$0 sm:$0xff] }
 0x159   : > { %vm743_vm15 = vcmp.ge.f32.partialorder %v685_v31, 0.0  ;;  %v775_v32 = vmul.f32 0.1, %v685_v31  ;;  %v806_v34 = vsel %vm742_vm14, %v682_v27, %v774_v29 }
 0x15b   : > { %v807_v35 = vsel %vm743_vm15, %v685_v31, %v775_v32 }
 0x15c   : > { %v827_v36 = vpack.c.bf16 %v807_v35, %v806_v34 }
 0x15e   : > { %1396 = vmatmul.mubr.bf16.gmra.mrb[36].mxu1 %v827_v36 }
 0x15f   : > { %1399 = vmatprep.mubr.bf16.mxu1 %v828_v30 }
 0x166   : > { %1400 = vmatmul.mubr.bf16.gmra.mrb[40].mxu1 %v829_v56 }
 0x167   : > { %1403 = vmatprep.mubr.bf16.mxu1 %v830_v20 }
 0x16e   : > { %1404 = vmatmul.mubr.bf16.gmra.mrb[44].mxu1 %v831_v44 }
 0x1e1   : > { %v1377_v16 = vpop.f32.mrb[16].mxu1 }
 0x1e2   : > { %v946_v26 = vadd.f32 %v1377_v16, %v1739_v57  ;;  %v937_v30 = vpop.f32.mrb[17].mxu1 }
 0x1e3   : > { %v938_v42 = vadd.f32 %v1739_v57, %v937_v30  ;;  %v1378_v52 = vpop.f32.mrb[18].mxu1 }
 0x1e4   : > { %1066 = vst [vmem:[%s1746_s9 + $0x10] sm:$0xff] %v946_v26  ;;  %v949_v56 = vadd.f32 %v1378_v52, %v1739_v57  ;;  %v940_v5 = vpop.f32.mrb[19].mxu1 }
 0x1e5   : > { %1064 = vst [vmem:[%s1746_s9] sm:$0xff] %v938_v42  ;;  %v941_v15 = vadd.f32 %v1739_v57, %v940_v5 }
 0x1e6   : > { %1067 = vst [vmem:[%s1746_s9 + $0x18] sm:$0xff] %v949_v56 }
 0x1e7   : > { %1065 = vst [vmem:[%s1746_s9 + $0x8] sm:$0xff] %v941_v15 }
 0x1f1   : > { %v1381_v20 = vpop.f32.mrb[20].mxu1 }
 0x1f2   : > { %v962_v33 = vadd.f32 %v1381_v20, %v1739_v57  ;;  %v953_v40 = vpop.f32.mrb[21].mxu1 }
 0x1f3   : > { %v954_v44 = vadd.f32 %v1739_v57, %v953_v40  ;;  %v1382_v37 = vpop.f32.mrb[22].mxu1 }
 0x1f4   : > { %1070 = vst [vmem:[%s1746_s9 + $0x30] sm:$0xff] %v962_v33  ;;  %v965_v38 = vadd.f32 %v1382_v37, %v1739_v57  ;;  %v956_v39 = vpop.f32.mrb[23].mxu1 }
 0x1f5   : > { %1068 = vst [vmem:[%s1746_s9 + $0x20] sm:$0xff] %v954_v44  ;;  %v957_v41 = vadd.f32 %v1739_v57, %v956_v39 }
 0x1f6   : > { %1071 = vst [vmem:[%s1746_s9 + $0x38] sm:$0xff] %v965_v38 }
 0x1f7   : > { %1069 = vst [vmem:[%s1746_s9 + $0x28] sm:$0xff] %v957_v41 }
 0x201   : > { %v1385_v43 = vpop.f32.mrb[24].mxu1 }
 0x202   : > { %v978_v45 = vadd.f32 %v1385_v43, %v1739_v57  ;;  %v969_v46 = vpop.f32.mrb[25].mxu1 }
 0x203   : > { %v970_v47 = vadd.f32 %v1739_v57, %v969_v46  ;;  %v1386_v48 = vpop.f32.mrb[26].mxu1 }
 0x204   : > { %1074 = vst [vmem:[%s1746_s9 + $0x50] sm:$0xff] %v978_v45  ;;  %v981_v49 = vadd.f32 %v1386_v48, %v1739_v57  ;;  %v972_v50 = vpop.f32.mrb[27].mxu1 }
 0x205   : > { %1072 = vst [vmem:[%s1746_s9 + $0x40] sm:$0xff] %v970_v47  ;;  %v973_v51 = vadd.f32 %v1739_v57, %v972_v50 }
 0x206   : > { %1075 = vst [vmem:[%s1746_s9 + $0x58] sm:$0xff] %v981_v49 }
 0x207   : > { %1073 = vst [vmem:[%s1746_s9 + $0x48] sm:$0xff] %v973_v51 }
 0x211   : > { %v1389_v53 = vpop.f32.mrb[28].mxu1 }
 0x212   : > { %v994_v54 = vadd.f32 %v1389_v53, %v1739_v57  ;;  %v985_v55 = vpop.f32.mrb[29].mxu1 }
 0x213   : > { %v986_v58 = vadd.f32 %v1739_v57, %v985_v55  ;;  %v1390_v59 = vpop.f32.mrb[30].mxu1 }
 0x214   : > { %1078 = vst [vmem:[%s1746_s9 + $0x70] sm:$0xff] %v994_v54  ;;  %v997_v60 = vadd.f32 %v1390_v59, %v1739_v57  ;;  %v988_v61 = vpop.f32.mrb[31].mxu1 }
 0x215   : > { %1076 = vst [vmem:[%s1746_s9 + $0x60] sm:$0xff] %v986_v58  ;;  %v989_v62 = vadd.f32 %v1739_v57, %v988_v61 }
 0x216   : > { %1079 = vst [vmem:[%s1746_s9 + $0x78] sm:$0xff] %v997_v60 }
 0x217   : > { %1077 = vst [vmem:[%s1746_s9 + $0x68] sm:$0xff] %v989_v62 }
 0x221   : > { %v1393_v63 = vpop.f32.mrb[32].mxu1 }
 0x222   : > { %v1010_v0 = vadd.f32 %v1393_v63, %v1739_v57  ;;  %v1001_v1 = vpop.f32.mrb[33].mxu1 }
 0x223   : > { %v1002_v2 = vadd.f32 %v1739_v57, %v1001_v1  ;;  %v1394_v3 = vpop.f32.mrb[34].mxu1 }
 0x224   : > { %1082 = vst [vmem:[%s1746_s9 + $0x90] sm:$0xff] %v1010_v0  ;;  %v1013_v4 = vadd.f32 %v1394_v3, %v1739_v57  ;;  %v1004_v6 = vpop.f32.mrb[35].mxu1 }
 0x225   : > { %1080 = vst [vmem:[%s1746_s9 + $0x80] sm:$0xff] %v1002_v2  ;;  %v1005_v7 = vadd.f32 %v1739_v57, %v1004_v6 }
 0x226   : > { %1083 = vst [vmem:[%s1746_s9 + $0x98] sm:$0xff] %v1013_v4 }
 0x227   : > { %1081 = vst [vmem:[%s1746_s9 + $0x88] sm:$0xff] %v1005_v7 }
 0x231   : > { %v1397_v8 = vpop.f32.mrb[36].mxu1 }
 0x232   : > { %v1026_v9 = vadd.f32 %v1397_v8, %v1739_v57  ;;  %v1017_v10 = vpop.f32.mrb[37].mxu1 }
 0x233   : > { %v1018_v11 = vadd.f32 %v1739_v57, %v1017_v10  ;;  %v1398_v12 = vpop.f32.mrb[38].mxu1 }
 0x234   : > { %1086 = vst [vmem:[%s1746_s9 + $0xb0] sm:$0xff] %v1026_v9  ;;  %v1029_v13 = vadd.f32 %v1398_v12, %v1739_v57  ;;  %v1020_v14 = vpop.f32.mrb[39].mxu1 }
 0x235   : > { %1084 = vst [vmem:[%s1746_s9 + $0xa0] sm:$0xff] %v1018_v11  ;;  %v1021_v17 = vadd.f32 %v1739_v57, %v1020_v14 }
 0x236   : > { %1087 = vst [vmem:[%s1746_s9 + $0xb8] sm:$0xff] %v1029_v13 }
 0x237   : > { %1085 = vst [vmem:[%s1746_s9 + $0xa8] sm:$0xff] %v1021_v17 }
 0x239   : > { %v1401_v18 = vpop.f32.mrb[40].mxu1 }
 0x23a   : > { %v1042_v19 = vadd.f32 %v1401_v18, %v1739_v57  ;;  %v1033_v21 = vpop.f32.mrb[41].mxu1 }
 0x23b   : > { %v1034_v22 = vadd.f32 %v1739_v57, %v1033_v21  ;;  %v1402_v23 = vpop.f32.mrb[42].mxu1 }
 0x23c   : > { %1090 = vst [vmem:[%s1746_s9 + $0xd0] sm:$0xff] %v1042_v19  ;;  %v1045_v24 = vadd.f32 %v1402_v23, %v1739_v57  ;;  %v1036_v25 = vpop.f32.mrb[43].mxu1 }
 0x23d   : > { %1088 = vst [vmem:[%s1746_s9 + $0xc0] sm:$0xff] %v1034_v22  ;;  %v1037_v27 = vadd.f32 %v1739_v57, %v1036_v25 }
 0x23e   : > { %1091 = vst [vmem:[%s1746_s9 + $0xd8] sm:$0xff] %v1045_v24 }
 0x23f   : > { %1089 = vst [vmem:[%s1746_s9 + $0xc8] sm:$0xff] %v1037_v27 }
 0x241   : > { %v1405_v28 = vpop.f32.mrb[44].mxu1 }
 0x242   : > { %v1058_v29 = vadd.f32 %v1405_v28, %v1739_v57  ;;  %v1049_v31 = vpop.f32.mrb[45].mxu1 }
 0x243   : > { %v1050_v32 = vadd.f32 %v1739_v57, %v1049_v31  ;;  %v1406_v34 = vpop.f32.mrb[46].mxu1 }
 0x244   : > { %1094 = vst [vmem:[%s1746_s9 + $0xf0] sm:$0xff] %v1058_v29  ;;  %v1061_v35 = vadd.f32 %v1406_v34, %v1739_v57  ;;  %v1052_v36 = vpop.f32.mrb[47].mxu1 }
 0x245   : > { %1092 = vst [vmem:[%s1746_s9 + $0xe0] sm:$0xff] %v1050_v32  ;;  %v1053_v16 = vadd.f32 %v1739_v57, %v1052_v36 }
 0x246   : > { %1095 = vst [vmem:[%s1746_s9 + $0xf8] sm:$0xff] %v1061_v35 }
 0x247   : > { %1093 = vst [vmem:[%s1746_s9 + $0xe8] sm:$0xff] %v1053_v16 }
 0x248 PF: > { %s15_s18 = sadd.s32 1, %s1509_s18  }
 0x249   : > { %p12_p4 = scmp.ge.s32.totalorder %s15_s18, 4  }
 0x24b   :  { %14 = sbr.rel (!%p12_p4) target bundleno = 1 (0x1), region = 70 }

</bundles_post_ra>
